<compile_context>
chip_gen: v6e
topology: v6e:2x2x1
jax: 0.10.0
libtpu: 0.0.40
codegen_flags: <defaults>
</compile_context>

<pallas_src>
import jax
import jax.numpy as jnp
from jax.experimental import pallas as pl
from jax.experimental.pallas import tpu as pltpu


def _round_up(x, m):
    return (x + m - 1) // m * m


# ---------------------------------------------------------------------------
# Fused matmul + bias + PReLU (+ residual) Pallas kernel
# ---------------------------------------------------------------------------
def _make_fused_kernel(has_residual: bool, res_scale: float):
    def kernel(w_ref, p_ref, b_ref, a_ref, *rest):
        if has_residual:
            r_ref, o_ref = rest
        else:
            (o_ref,) = rest
        # MXU: bf16 x bf16 -> f32 accumulate. N-dim = tile_m (lane dense).
        acc = jnp.dot(w_ref[...], p_ref[...], preferred_element_type=jnp.float32)
        acc = acc + b_ref[...]                        # (R, tm) + (R, 1), f32
        alpha = a_ref[0]                              # shared PReLU slope (SMEM)
        acc = jnp.where(acc >= 0.0, acc, alpha * acc)
        if has_residual:
            r = r_ref[...].astype(jnp.float32)        # residual may be bf16
            if res_scale == 1.0:                      # trace-time branch
                acc = acc + r
            elif res_scale == -1.0:
                acc = acc - r
            else:
                acc = acc + res_scale * r
        o_ref[...] = acc.astype(o_ref.dtype)
    return kernel


def fused_matmul(w_mat, patches_t, bias, alpha, residual=None, res_scale=1.0,
                 out_dtype=jnp.float32, tile_m=1024, mxu_dtype=jnp.bfloat16):
    """(R0, K) @ (K, M) with fused bias/PReLU/residual, tiled over M.

    Rows padded to a multiple of 8, columns to a multiple of the tile size
    (only when needed); padding sliced off on return.
    """
    R0, K = w_mat.shape
    Kp, M = patches_t.shape
    assert K == Kp
    R = _round_up(R0, 8)                      # sublane-aligned output rows

    # Tile choice: at most tile_m, but force >= 2 grid steps when M allows so
    # ("parallel",) can use both TensorCores on v7x (no-op on v5e/v6e).
    m_128 = _round_up(M, 128)
    tm = min(tile_m, max(128, _round_up(pl.cdiv(m_128, 2), 128)))
    m_pad = _round_up(M, tm)

    w_p = w_mat.astype(mxu_dtype)
    if R != R0:
        w_p = jnp.pad(w_p, ((0, R - R0), (0, 0)))
    p_p = patches_t.astype(mxu_dtype)               # no-op if already bf16
    if m_pad != M:
        p_p = jnp.pad(p_p, ((0, 0), (0, m_pad - M)))
    b_p = bias.reshape(-1).astype(jnp.float32)
    if R != R0:
        b_p = jnp.pad(b_p, (0, R - R0))
    b_p = b_p.reshape(R, 1)
    a_p = jnp.asarray(alpha, jnp.float32).reshape(1)

    in_specs = [
        pl.BlockSpec((R, K), lambda i: (0, 0)),              # weights (resident)
        pl.BlockSpec((K, tm), lambda i: (0, i)),             # patch tile (pipelined)
        pl.BlockSpec((R, 1), lambda i: (0, 0)),              # bias (resident)
        pl.BlockSpec(memory_space=pltpu.MemorySpace.SMEM),   # PReLU alpha scalar
    ]
    args = [w_p, p_p, b_p, a_p]
    if residual is not None:
        r_p = residual
        if R != R0 or m_pad != M:
            r_p = jnp.pad(r_p, ((0, R - R0), (0, m_pad - M)))
        in_specs.append(pl.BlockSpec((R, tm), lambda i: (0, i)))
        args.append(r_p)

    out = pl.pallas_call(
        _make_fused_kernel(residual is not None, float(res_scale)),
        grid=(m_pad // tm,),
        in_specs=in_specs,
        out_specs=pl.BlockSpec((R, tm), lambda i: (0, i)),
        out_shape=jax.ShapeDtypeStruct((R, m_pad), out_dtype),
        compiler_params=pltpu.CompilerParams(
            dimension_semantics=("parallel",),
            vmem_limit_bytes=32 * 1024 * 1024,
        ),
    )(*args)
    if R != R0 or m_pad != M:
        out = out[:R0, :M]
    return out


# ---------------------------------------------------------------------------
# Layout glue (data movement only; internal layout is (C, N, H, W))
# ---------------------------------------------------------------------------
def im2col_T(x_cnhw, kh, kw, stride, pad):
    """Transposed im2col: (C, N, H, W) -> (C*kh*kw, N*OH*OW).

    Built from kh*kw STATIC strided slices + concat (no gather). Row order is
    (c, ki, kj), matching w.reshape(Cout, Cin*kh*kw).
    """
    C, N, H, W = x_cnhw.shape
    if pad:
        x_cnhw = jnp.pad(x_cnhw, ((0, 0), (0, 0), (pad, pad), (pad, pad)))
    Hp, Wp = H + 2 * pad, W + 2 * pad
    OH = (Hp - kh) // stride + 1
    OW = (Wp - kw) // stride + 1
    M = N * OH * OW
    cols = []
    for ki in range(kh):
        for kj in range(kw):
            sl = jax.lax.slice(
                x_cnhw,
                (0, 0, ki, kj),
                (C, N, ki + (OH - 1) * stride + 1, kj + (OW - 1) * stride + 1),
                (1, 1, stride, stride))                     # (C, N, OH, OW)
            cols.append(sl.reshape(C, 1, M))
    patches = jnp.concatenate(cols, axis=1).reshape(C * kh * kw, M)
    return patches, OH, OW


def conv_block(x, w, b, alpha, stride, pad, residual=None, res_scale=1.0,
               out_dtype=jnp.float32, tile_m=1024, mxu_dtype=jnp.bfloat16):
    """ConvBlock (Conv2d + PReLU). x: (Cin,N,H,W) (bf16). w: (Cout,Cin,kh,kw)."""
    Cout, Cin, kh, kw = w.shape
    _, N, _, _ = x.shape
    patches_t, OH, OW = im2col_T(x, kh, kw, stride, pad)
    w_mat = w.reshape(Cout, Cin * kh * kw)
    res_mat = None if residual is None else residual.reshape(Cout, N * OH * OW)
    out = fused_matmul(w_mat, patches_t, b, alpha, res_mat, res_scale,
                       out_dtype, tile_m, mxu_dtype)
    return out.reshape(Cout, N, OH, OW)


def deconv_block(x, w_t, b, alpha, stride, pad, residual_img=None,
                 res_scale=1.0, out_dtype=jnp.float32, tile_m=1024,
                 mxu_dtype=jnp.bfloat16):
    """DeconvBlock (ConvTranspose2d + PReLU) via sub-pixel decomposition.

    x: (Cin,N,H,W) (bf16).  w_t: (Cin,Cout,k,k) (PyTorch ConvTranspose2d).
    residual_img (optional, bf16): (Cout,N,OH,OW), added with res_scale inside
    the fused epilogue (used here to produce h0 - x directly).
    """
    Cin, Cout, kh, kw = w_t.shape
    s, p = stride, pad
    assert kh == kw == 2 * s, "sub-pixel path assumes kernel == 2*stride"
    _, N, H, W = x.shape
    OH = (H - 1) * s - 2 * p + kh
    OW = (W - 1) * s - 2 * p + kw

    # 2x2-tap windows over the UN-dilated input (one window per phase cell).
    patches_t, AH, AW = im2col_T(x, 2, 2, 1, 1)          # (Cin*4, N*AH*AW), AH=H+1

    # Phase-stacked weight matrix: rows enumerate (rr, rc, cout).
    w_r = w_t.reshape(Cin, Cout, 2, s, 2, s)             # ki = e_r*s + rr
    w_r = jnp.flip(w_r, axis=(2, 4))                     # e -> di = 1 - e
    w_dec = w_r.transpose(3, 5, 1, 0, 2, 4).reshape(s * s * Cout, Cin * 4)
    b_dec = jnp.tile(b, s * s)
    R = s * s * Cout

    # Residual in phase layout (inverse pixel shuffle of residual_img), bf16.
    res_mat = None
    if residual_img is not None:
        xp = jnp.pad(residual_img, ((0, 0), (0, 0), (p, p), (p, p)))
        xr = xp.reshape(Cout, N, AH, s, AW, s)
        res_mat = xr.transpose(3, 5, 0, 1, 2, 4).reshape(R, N * AH * AW)

    out = fused_matmul(w_dec, patches_t, b_dec, alpha, res_mat, res_scale,
                       out_dtype, tile_m, mxu_dtype)

    # Pixel-shuffle assembly: (rr,rc,c,n,a,b) -> (c, n, s*a + rr - p, s*b + rc - p)
    out = out.reshape(s, s, Cout, N, AH, AW).transpose(2, 3, 4, 0, 5, 1)
    out = out.reshape(Cout, N, s * AH, s * AW)
    return out[:, :, p:p + OH, p:p + OW]


# ---------------------------------------------------------------------------
# DownBlock forward
# ---------------------------------------------------------------------------
def down_block_forward(params, x_nchw, stride=4, padding=2, tile_m=1024,
                       mxu_dtype=jnp.bfloat16):
    x = jnp.transpose(x_nchw, (1, 0, 2, 3))              # (C, N, H, W) internal
    x_bf = x.astype(mxu_dtype)                           # cast raw activation once
    # l0 = PReLU(conv1(x))  (kept f32: feeds the final residual add)
    l0 = conv_block(x_bf, params["w1"], params["b1"], params["a1"],
                    stride, padding, out_dtype=jnp.float32,
                    tile_m=tile_m, mxu_dtype=mxu_dtype)
    # h0 - x, h0 = PReLU(deconv(l0)); subtraction fused, result emitted in bf16
    # (it is only ever consumed as conv3's bf16 MXU input).
    h0mx = deconv_block(l0.astype(mxu_dtype), params["w2"], params["b2"],
                        params["a2"], stride, padding,
                        residual_img=x_bf, res_scale=-1.0,
                        out_dtype=mxu_dtype, tile_m=tile_m, mxu_dtype=mxu_dtype)
    # l1 + l0, l1 = PReLU(conv3(h0 - x)); add fused, final output f32.
    out = conv_block(h0mx, params["w3"], params["b3"], params["a3"],
                     stride, padding, residual=l0, res_scale=1.0,
                     out_dtype=jnp.float32, tile_m=tile_m, mxu_dtype=mxu_dtype)
    return jnp.transpose(out, (1, 0, 2, 3))              # back to NCHW


def init_down_block_params(key, num_filter, kernel_size=8):
    """Deterministic synthetic params (shapes match the PyTorch module)."""
    ks = jax.random.split(key, 6)
    fan_in = num_filter * kernel_size * kernel_size
    bound = 1.0 / (fan_in ** 0.5)

    def u(k, shape):
        return jax.random.uniform(k, shape, jnp.float32, -bound, bound)

    return {
        "w1": u(ks[0], (num_filter, num_filter, kernel_size, kernel_size)),
        "b1": u(ks[1], (num_filter,)),
        "a1": jnp.array(0.25, jnp.float32),
        # ConvTranspose2d weight layout: (Cin, Cout, kh, kw)
        "w2": u(ks[2], (num_filter, num_filter, kernel_size, kernel_size)),
        "b2": u(ks[3], (num_filter,)),
        "a2": jnp.array(0.25, jnp.float32),
        "w3": u(ks[4], (num_filter, num_filter, kernel_size, kernel_size)),
        "b3": u(ks[5], (num_filter,)),
        "a3": jnp.array(0.25, jnp.float32),
    }


# ---------------------------------------------------------------------------
# Pure-JAX reference (correctness check only)
# ---------------------------------------------------------------------------
def reference_forward(params, x, stride=4, padding=2):
    dn = ("NCHW", "OIHW", "NCHW")
    hi = jax.lax.Precision.HIGHEST

    def prelu(v, a):
        return jnp.where(v >= 0.0, v, a * v)

    def conv(v, w, b):
        y = jax.lax.conv_general_dilated(
            v, w, (stride, stride), [(padding, padding)] * 2,
            dimension_numbers=dn, precision=hi)
        return y + b[None, :, None, None]

    def deconv(v, w, b):
        k = w.shape[2]
        w_f = jnp.flip(w, (2, 3)).transpose(1, 0, 2, 3)
        y = jax.lax.conv_general_dilated(
            v, w_f, (1, 1), [(k - 1 - padding, k - 1 - padding)] * 2,
            lhs_dilation=(stride, stride), dimension_numbers=dn, precision=hi)
        return y + b[None, :, None, None]

    l0 = prelu(conv(x, params["w1"], params["b1"]), params["a1"])
    h0 = prelu(deconv(l0, params["w2"], params["b2"]), params["a2"])
    l1 = prelu(conv(h0 - x, params["w3"], params["b3"]), params["a3"])
    return l1 + l0


if __name__ == "__main__":
    key = jax.random.PRNGKey(0)
    kp, kx = jax.random.split(key)
    num_filter = 4
    params = init_down_block_params(kp, num_filter)
    x = jax.random.normal(kx, (2, num_filter, 16, 16), jnp.float32)   # NCHW

    out = jax.jit(down_block_forward)(params, x)
    out = jax.block_until_ready(out)

    # conv(16 -> 4), deconv(4 -> 16), conv(16 -> 4): output is (N, C, 4, 4)
    assert out.shape == (2, num_filter, 4, 4), out.shape
    assert out.dtype == jnp.float32

    # Correctness check vs an f32 XLA reference (kernel MXU inputs, the h0-x
    # intermediate and the deconv residual stream are bf16; accumulation and
    # epilogue are f32 -> loose tolerance).
    ref = jax.block_until_ready(reference_forward(params, x))
    err = float(jnp.max(jnp.abs(out - ref)))
    assert err < 7.5e-2, f"max abs err too large: {err}"

    print("KERNEL_OK")
</pallas_src>

<mosaic_0001>
module attributes {stable_mosaic.version = 11 : i64} {
  func.func @kernel(%arg0: i32, %arg1: memref<8x256xbf16, #tpu.memory_space<vmem>>, %arg2: memref<256x128xbf16, #tpu.memory_space<vmem>>, %arg3: memref<8x1xf32, #tpu.memory_space<vmem>>, %arg4: memref<1xf32, #tpu.memory_space<smem>>, %arg5: memref<8x128xf32, #tpu.memory_space<vmem>>) attributes {dimension_semantics = [#tpu.dimension_semantics<parallel>], iteration_bounds = array<i64: 1>, scalar_prefetch = 0 : i64, scratch_operands = 0 : i64, tpu.core_type = #tpu.core_type<tc>, window_params = [{pipeline_mode = #tpu.pipeline_mode<synchronous>, transform_indices = @transform_0, window_bounds = array<i64: 8, 256>}, {transform_indices = @transform_1, window_bounds = array<i64: 256, 128>}, {pipeline_mode = #tpu.pipeline_mode<synchronous>, transform_indices = @transform_2, window_bounds = array<i64: 8, 1>}, {transform_indices = @transform_3, window_bounds = array<i64: 1>}, {transform_indices = @transform_4, window_bounds = array<i64: 8, 128>}]} {
    %c0 = arith.constant 0 : index
    %c0_0 = arith.constant 0 : index
    %0 = vector.load %arg1[%c0, %c0_0] : memref<8x256xbf16, #tpu.memory_space<vmem>>, vector<8x256xbf16>
    %c0_1 = arith.constant 0 : index
    %c0_2 = arith.constant 0 : index
    %1 = vector.load %arg2[%c0_1, %c0_2] : memref<256x128xbf16, #tpu.memory_space<vmem>>, vector<256x128xbf16>
    %cst = arith.constant dense<0.000000e+00> : vector<8x128xf32>
    %2 = tpu.matmul %0, %1, %cst {dimension_numbers = #tpu.dot_dimension_numbers<[1], [0], [0], [1], [0, 0, 1, 1], [], []>} : vector<8x256xbf16>, vector<256x128xbf16>, vector<8x128xf32> -> vector<8x128xf32>
    %c0_3 = arith.constant 0 : index
    %c0_4 = arith.constant 0 : index
    %3 = vector.load %arg3[%c0_3, %c0_4] : memref<8x1xf32, #tpu.memory_space<vmem>>, vector<8x1xf32>
    %4 = vector.broadcast %3 : vector<8x1xf32> to vector<8x128xf32>
    %5 = arith.addf %2, %4 : vector<8x128xf32>
    %c0_5 = arith.constant 0 : index
    %6 = memref.load %arg4[%c0_5] : memref<1xf32, #tpu.memory_space<smem>>
    %cst_6 = arith.constant 0.000000e+00 : f32
    %7 = vector.broadcast %cst_6 : f32 to vector<8x128xf32>
    %8 = arith.cmpf oge, %5, %7 : vector<8x128xf32>
    %9 = vector.broadcast %6 : f32 to vector<8x128xf32>
    %10 = arith.mulf %9, %5 : vector<8x128xf32>
    %11 = arith.select %8, %5, %10 : vector<8x128xi1>, vector<8x128xf32>
    %c0_7 = arith.constant 0 : index
    %c0_8 = arith.constant 0 : index
    %12 = vector.load %arg5[%c0_7, %c0_8] : memref<8x128xf32, #tpu.memory_space<vmem>>, vector<8x128xf32>
    tpu.vector_store %arg5[%c0_7, %c0_8], %11 {strides = array<i32>} : memref<8x128xf32, #tpu.memory_space<vmem>>, vector<8x128xf32>,
    return
  }
  func.func @transform_0(%arg0: i32) -> (i32, i32) {
    %c0_i32 = arith.constant 0 : i32
    %c0_i32_0 = arith.constant 0 : i32
    %c0_i32_1 = arith.constant 0 : i32
    return %c0_i32, %c0_i32_0 : i32, i32
  }
  func.func @transform_1(%arg0: i32) -> (i32, i32) {
    %c0_i32 = arith.constant 0 : i32
    %c0_i32_0 = arith.constant 0 : i32
    return %c0_i32, %arg0 : i32, i32
  }
  func.func @transform_2(%arg0: i32) -> (i32, i32) {
    %c0_i32 = arith.constant 0 : i32
    %c0_i32_0 = arith.constant 0 : i32
    %c0_i32_1 = arith.constant 0 : i32
    return %c0_i32, %c0_i32_0 : i32, i32
  }
  func.func @transform_3(%arg0: i32) -> i32 {
    %c0_i32 = arith.constant 0 : i32
    %c0_i32_0 = arith.constant 0 : i32
    return %c0_i32 : i32
  }
  func.func @transform_4(%arg0: i32) -> (i32, i32) {
    %c0_i32 = arith.constant 0 : i32
    %c0_i32_0 = arith.constant 0 : i32
    return %c0_i32, %arg0 : i32, i32
  }
}

module attributes {stable_mosaic.version = 11 : i64} {
  func.func @kernel(%arg0: i32, %arg1: memref<64x16xbf16, #tpu.memory_space<vmem>>, %arg2: memref<16x128xbf16, #tpu.memory_space<vmem>>, %arg3: memref<64x1xf32, #tpu.memory_space<vmem>>, %arg4: memref<1xf32, #tpu.memory_space<smem>>, %arg5: memref<64x128xbf16, #tpu.memory_space<vmem>>, %arg6: memref<64x128xbf16, #tpu.memory_space<vmem>>) attributes {dimension_semantics = [#tpu.dimension_semantics<parallel>], iteration_bounds = array<i64: 1>, scalar_prefetch = 0 : i64, scratch_operands = 0 : i64, tpu.core_type = #tpu.core_type<tc>, window_params = [{pipeline_mode = #tpu.pipeline_mode<synchronous>, transform_indices = @transform_0, window_bounds = array<i64: 64, 16>}, {transform_indices = @transform_1, window_bounds = array<i64: 16, 128>}, {pipeline_mode = #tpu.pipeline_mode<synchronous>, transform_indices = @transform_2, window_bounds = array<i64: 64, 1>}, {transform_indices = @transform_3, window_bounds = array<i64: 1>}, {transform_indices = @transform_4, window_bounds = array<i64: 64, 128>}, {transform_indices = @transform_5, window_bounds = array<i64: 64, 128>}]} {
    %c0 = arith.constant 0 : index
    %c0_0 = arith.constant 0 : index
    %0 = vector.load %arg1[%c0, %c0_0] : memref<64x16xbf16, #tpu.memory_space<vmem>>, vector<64x16xbf16>
    %c0_1 = arith.constant 0 : index
    %c0_2 = arith.constant 0 : index
    %1 = vector.load %arg2[%c0_1, %c0_2] : memref<16x128xbf16, #tpu.memory_space<vmem>>, vector<16x128xbf16>
    %cst = arith.constant dense<0.000000e+00> : vector<64x128xf32>
    %2 = tpu.matmul %0, %1, %cst {dimension_numbers = #tpu.dot_dimension_numbers<[1], [0], [0], [1], [0, 0, 1, 1], [], []>} : vector<64x16xbf16>, vector<16x128xbf16>, vector<64x128xf32> -> vector<64x128xf32>
    %c0_3 = arith.constant 0 : index
    %c0_4 = arith.constant 0 : index
    %3 = vector.load %arg3[%c0_3, %c0_4] : memref<64x1xf32, #tpu.memory_space<vmem>>, vector<64x1xf32>
    %4 = vector.broadcast %3 : vector<64x1xf32> to vector<64x128xf32>
    %5 = arith.addf %2, %4 : vector<64x128xf32>
    %c0_5 = arith.constant 0 : index
    %6 = memref.load %arg4[%c0_5] : memref<1xf32, #tpu.memory_space<smem>>
    %cst_6 = arith.constant 0.000000e+00 : f32
    %7 = vector.broadcast %cst_6 : f32 to vector<64x128xf32>
    %8 = arith.cmpf oge, %5, %7 : vector<64x128xf32>
    %9 = vector.broadcast %6 : f32 to vector<64x128xf32>
    %10 = arith.mulf %9, %5 : vector<64x128xf32>
    %11 = arith.select %8, %5, %10 : vector<64x128xi1>, vector<64x128xf32>
    %c0_7 = arith.constant 0 : index
    %c0_8 = arith.constant 0 : index
    %12 = vector.load %arg5[%c0_7, %c0_8] : memref<64x128xbf16, #tpu.memory_space<vmem>>, vector<64x128xbf16>
    %13 = arith.extf %12 : vector<64x128xbf16> to vector<64x128xf32>
    %14 = arith.subf %11, %13 : vector<64x128xf32>
    %15 = arith.truncf %14 : vector<64x128xf32> to vector<64x128xbf16>
    %c0_9 = arith.constant 0 : index
    %c0_10 = arith.constant 0 : index
    %16 = vector.load %arg6[%c0_9, %c0_10] : memref<64x128xbf16, #tpu.memory_space<vmem>>, vector<64x128xbf16>
    tpu.vector_store %arg6[%c0_9, %c0_10], %15 {strides = array<i32>} : memref<64x128xbf16, #tpu.memory_space<vmem>>, vector<64x128xbf16>,
    return
  }
  func.func @transform_0(%arg0: i32) -> (i32, i32) {
    %c0_i32 = arith.constant 0 : i32
    %c0_i32_0 = arith.constant 0 : i32
    %c0_i32_1 = arith.constant 0 : i32
    return %c0_i32, %c0_i32_0 : i32, i32
  }
  func.func @transform_1(%arg0: i32) -> (i32, i32) {
    %c0_i32 = arith.constant 0 : i32
    %c0_i32_0 = arith.constant 0 : i32
    return %c0_i32, %arg0 : i32, i32
  }
  func.func @transform_2(%arg0: i32) -> (i32, i32) {
    %c0_i32 = arith.constant 0 : i32
    %c0_i32_0 = arith.constant 0 : i32
    %c0_i32_1 = arith.constant 0 : i32
    return %c0_i32, %c0_i32_0 : i32, i32
  }
  func.func @transform_3(%arg0: i32) -> i32 {
    %c0_i32 = arith.constant 0 : i32
    %c0_i32_0 = arith.constant 0 : i32
    return %c0_i32 : i32
  }
  func.func @transform_4(%arg0: i32) -> (i32, i32) {
    %c0_i32 = arith.constant 0 : i32
    %c0_i32_0 = arith.constant 0 : i32
    return %c0_i32, %arg0 : i32, i32
  }
  func.func @transform_5(%arg0: i32) -> (i32, i32) {
    %c0_i32 = arith.constant 0 : i32
    %c0_i32_0 = arith.constant 0 : i32
    return %c0_i32, %arg0 : i32, i32
  }
}

module attributes {stable_mosaic.version = 11 : i64} {
  func.func @kernel(%arg0: i32, %arg1: memref<8x256xbf16, #tpu.memory_space<vmem>>, %arg2: memref<256x128xbf16, #tpu.memory_space<vmem>>, %arg3: memref<8x1xf32, #tpu.memory_space<vmem>>, %arg4: memref<1xf32, #tpu.memory_space<smem>>, %arg5: memref<8x128xf32, #tpu.memory_space<vmem>>, %arg6: memref<8x128xf32, #tpu.memory_space<vmem>>) attributes {dimension_semantics = [#tpu.dimension_semantics<parallel>], iteration_bounds = array<i64: 1>, scalar_prefetch = 0 : i64, scratch_operands = 0 : i64, tpu.core_type = #tpu.core_type<tc>, window_params = [{pipeline_mode = #tpu.pipeline_mode<synchronous>, transform_indices = @transform_0, window_bounds = array<i64: 8, 256>}, {transform_indices = @transform_1, window_bounds = array<i64: 256, 128>}, {pipeline_mode = #tpu.pipeline_mode<synchronous>, transform_indices = @transform_2, window_bounds = array<i64: 8, 1>}, {transform_indices = @transform_3, window_bounds = array<i64: 1>}, {transform_indices = @transform_4, window_bounds = array<i64: 8, 128>}, {transform_indices = @transform_5, window_bounds = array<i64: 8, 128>}]} {
    %c0 = arith.constant 0 : index
    %c0_0 = arith.constant 0 : index
    %0 = vector.load %arg1[%c0, %c0_0] : memref<8x256xbf16, #tpu.memory_space<vmem>>, vector<8x256xbf16>
    %c0_1 = arith.constant 0 : index
    %c0_2 = arith.constant 0 : index
    %1 = vector.load %arg2[%c0_1, %c0_2] : memref<256x128xbf16, #tpu.memory_space<vmem>>, vector<256x128xbf16>
    %cst = arith.constant dense<0.000000e+00> : vector<8x128xf32>
    %2 = tpu.matmul %0, %1, %cst {dimension_numbers = #tpu.dot_dimension_numbers<[1], [0], [0], [1], [0, 0, 1, 1], [], []>} : vector<8x256xbf16>, vector<256x128xbf16>, vector<8x128xf32> -> vector<8x128xf32>
    %c0_3 = arith.constant 0 : index
    %c0_4 = arith.constant 0 : index
    %3 = vector.load %arg3[%c0_3, %c0_4] : memref<8x1xf32, #tpu.memory_space<vmem>>, vector<8x1xf32>
    %4 = vector.broadcast %3 : vector<8x1xf32> to vector<8x128xf32>
    %5 = arith.addf %2, %4 : vector<8x128xf32>
    %c0_5 = arith.constant 0 : index
    %6 = memref.load %arg4[%c0_5] : memref<1xf32, #tpu.memory_space<smem>>
    %cst_6 = arith.constant 0.000000e+00 : f32
    %7 = vector.broadcast %cst_6 : f32 to vector<8x128xf32>
    %8 = arith.cmpf oge, %5, %7 : vector<8x128xf32>
    %9 = vector.broadcast %6 : f32 to vector<8x128xf32>
    %10 = arith.mulf %9, %5 : vector<8x128xf32>
    %11 = arith.select %8, %5, %10 : vector<8x128xi1>, vector<8x128xf32>
    %c0_7 = arith.constant 0 : index
    %c0_8 = arith.constant 0 : index
    %12 = vector.load %arg5[%c0_7, %c0_8] : memref<8x128xf32, #tpu.memory_space<vmem>>, vector<8x128xf32>
    %13 = arith.addf %11, %12 : vector<8x128xf32>
    %c0_9 = arith.constant 0 : index
    %c0_10 = arith.constant 0 : index
    %14 = vector.load %arg6[%c0_9, %c0_10] : memref<8x128xf32, #tpu.memory_space<vmem>>, vector<8x128xf32>
    tpu.vector_store %arg6[%c0_9, %c0_10], %13 {strides = array<i32>} : memref<8x128xf32, #tpu.memory_space<vmem>>, vector<8x128xf32>,
    return
  }
  func.func @transform_0(%arg0: i32) -> (i32, i32) {
    %c0_i32 = arith.constant 0 : i32
    %c0_i32_0 = arith.constant 0 : i32
    %c0_i32_1 = arith.constant 0 : i32
    return %c0_i32, %c0_i32_0 : i32, i32
  }
  func.func @transform_1(%arg0: i32) -> (i32, i32) {
    %c0_i32 = arith.constant 0 : i32
    %c0_i32_0 = arith.constant 0 : i32
    return %c0_i32, %arg0 : i32, i32
  }
  func.func @transform_2(%arg0: i32) -> (i32, i32) {
    %c0_i32 = arith.constant 0 : i32
    %c0_i32_0 = arith.constant 0 : i32
    %c0_i32_1 = arith.constant 0 : i32
    return %c0_i32, %c0_i32_0 : i32, i32
  }
  func.func @transform_3(%arg0: i32) -> i32 {
    %c0_i32 = arith.constant 0 : i32
    %c0_i32_0 = arith.constant 0 : i32
    return %c0_i32 : i32
  }
  func.func @transform_4(%arg0: i32) -> (i32, i32) {
    %c0_i32 = arith.constant 0 : i32
    %c0_i32_0 = arith.constant 0 : i32
    return %c0_i32, %arg0 : i32, i32
  }
  func.func @transform_5(%arg0: i32) -> (i32, i32) {
    %c0_i32 = arith.constant 0 : i32
    %c0_i32_0 = arith.constant 0 : i32
    return %c0_i32, %arg0 : i32, i32
  }
}

</mosaic_0001>

<bundles_post_ra>
// kernel: down_block_forward.3
= control target key start
LH: loop header
LB: loop body
LE: loop exit
PB: predicated region body
PF: predicated region fallthrough
CT: control target
= control target key end

     0   :  { %v271_v1 = vmov 0   ;;  %s357_s1 = inlined_call_operand.vmem [shape: bf16[256,128], index: 1, kind: input, shape index: {}]   ;;  %s358_s0 = inlined_call_operand.vmem [shape: bf16[8,256], index: 0, kind: input, shape index: {}]   ;;  %s359_s2 = inlined_call_operand.vmem [shape: f32[8,1], index: 2, kind: input, shape index: {}]   ;;  %s360_s3 = inlined_call_operand.<no memory space> [shape: f32[1], index: 3, kind: input, shape index: {}]   ;;  %s361_s4 = inlined_call_operand.vmem [shape: f32[8,128], index: 4, kind: output, shape index: {}]  }
   0x1   :  { %v253_v0 = vld [vmem:[%s357_s1 + $0x78] sm:$0xff]   ;;  %252 = vset.pattern.permute.xlu0 %v271_v1  ;;  %v255_v3 = vld [vmem:[%s357_s1 + $0x70] sm:$0xff]   ;;  %v257_v5 = vld [vmem:[%s357_s1 + $0x68] sm:$0xff]   ;;  %v203_v25 = vstv %s360_s3 }
   0x2   :  { %v254_v2 = vld [vmem:[%s357_s1 + $0x38] sm:$0xff]   ;;  %229 = vmatprep.subr.bf16.mxu0 %v253_v0  ;;  %v256_v4 = vld [vmem:[%s357_s1 + $0x30] sm:$0xff]   ;;  %v258_v6 = vld [vmem:[%s357_s1 + $0x28] sm:$0xff]  }
   0x3   :  { %230 = vmatpush3.bf16.msra.mxu0 %v254_v2  ;;  %v259_v7 = vld [vmem:[%s357_s1 + $0x60] sm:$0xff]   ;;  %v261_v9 = vld [vmem:[%s357_s1 + $0x58] sm:$0xff]   ;;  %v263_v11 = vld [vmem:[%s357_s1 + $0x50] sm:$0xff]  }
   0x4   :  { %231 = vmatprep.subr.bf16.mxu0 %v255_v3  ;;  %v260_v8 = vld [vmem:[%s357_s1 + $0x20] sm:$0xff]   ;;  %v262_v10 = vld [vmem:[%s357_s1 + $0x18] sm:$0xff]   ;;  %v264_v15 = vld [vmem:[%s357_s1 + $0x10] sm:$0xff]  }
   0x5   :  { %v19_v12 = vld [vmem:[%s358_s0] sm:$0xff]  ;;  %v265_v16 = vld [vmem:[%s357_s1 + $0x48] sm:$0xff]  }
   0x6   :  { %v52_v13 = vld [vmem:[%s359_s2] sm:$0xff]  ;;  %v212_v14 = vcombine.high %v19_v12, %v19_v12  ;;  %v266_v17 = vld [vmem:[%s357_s1 + $0x8] sm:$0xff]   ;;  %v211_v20 = vcombine.low %v19_v12, %v19_v12 }
   0x7   :  { %232 = vmatpush3.bf16.msra.mxu0 %v256_v4  ;;  %55 = vperm.xlu0 %252, %v52_v13   ;;  %v267_v18 = vld [vmem:[%s357_s1 + $0x40] sm:$0xff]  }
   0x8   :  { %233 = vmatprep.subr.bf16.mxu0 %v257_v5  ;;  %193 = vmatprep.mubr.bf16.mxu0 %v212_v14  ;;  %v268_v19 = vld [vmem:[%s357_s1] sm:$0xff]  }
   0xb   :  { %234 = vmatpush3.bf16.msra.mxu0 %v258_v6 }
   0xc   :  { %235 = vmatprep.subr.bf16.mxu0 %v259_v7 }
   0xf   :  { %236 = vmatpush3.bf16.msra.mxu0 %v260_v8 }
  0x10   :  { %237 = vmatprep.subr.bf16.mxu0 %v261_v9 }
  0x13   :  { %238 = vmatpush3.bf16.msra.mxu0 %v262_v10 }
  0x14   :  { %239 = vmatprep.subr.bf16.mxu0 %v263_v11 }
  0x17   :  { %240 = vmatpush3.bf16.msra.mxu0 %v264_v15 }
  0x18   :  { %241 = vmatprep.subr.bf16.mxu0 %v265_v16 }
  0x1b   :  { %242 = vmatpush3.bf16.msra.mxu0 %v266_v17 }
  0x1c   :  { %243 = vmatprep.subr.bf16.mxu0 %v267_v18 }
  0x1f   :  { %244 = vmatpush3.bf16.msra.mxu0 %v268_v19 }
  0x22   :  { %194 = vmatmul.mubr.bf16.vlgmr.msra.gmra.mxu0 %v211_v20 }
  0x82   :  { %v56_v23 = vpop.permute.xlu0 %55 }
  0xe2   :  { %v245_v21 = vpop.f32.mrf.mxu0 }
  0xe4   :  { %v246_v22 = vpop.f32.mrf.mxu0 }
  0xe5   :  { %v247_v24 = vadd.f32 %v246_v22, %v245_v21 }
  0xe6   :  { %v248_v26 = vpop.f32.mrf.mxu0 }
  0xe7   :  { %v196_v27 = vadd.f32 %v247_v24, %v56_v23 }
  0xe8   :  { %v249_v28 = vpop.f32.mrf.mxu0 }
  0xe9   :  { %vm202_vm0 = vcmp.ge.f32.partialorder %v196_v27, 0.0  ;;  %v204_v29 = vmul.f32 %v203_v25, %v196_v27 }
  0xeb   :  { %v205_v30 = vsel %vm202_vm0, %v196_v27, %v204_v29 }
  0xec   :  { %206 = vst [vmem:[%s361_s4] sm:$0xff] %v205_v30 }

// kernel: tile.8
= control target key start
LH: loop header
LB: loop body
LE: loop exit
PB: predicated region body
PF: predicated region fallthrough
CT: control target
= control target key end

     0   :  { %s28_s0 = inlined_call_operand.vmem [shape: f32[4], index: 0, kind: input, shape index: {}]   ;;  %s29_s1 = inlined_call_operand.vmem [shape: f32[16,4], index: 1, kind: output, shape index: {}]  }
   0x1   :  { %v4_v0 = vld [vmem:[%s28_s0] ss:$0 sm:$0xff] }
   0x2   :  { %5 = vst [vmem:[%s29_s1] sm:$0xff] %v4_v0  ;;  %8 = vst [vmem:[%s29_s1 + $0x8] sm:$0xff] %v4_v0 }

// kernel: tile.0
= control target key start
LH: loop header
LB: loop body
LE: loop exit
PB: predicated region body
PF: predicated region fallthrough
CT: control target
= control target key end

     0   :  { %vm3_vm0 = vcmask 7168   ;;  %s64_s10 = smov 127   ;;  %s65_s15 = smov 125   ;;  %s114_s0 = inlined_call_operand.vmem [shape: f32[16,4], index: 0, kind: input, shape index: {}]   ;;  %s115_s1 = inlined_call_operand.vmem [shape: f32[64,1], index: 1, kind: output, shape index: {}]  }
   0x1   :  { %v23_v0 = vld [vmem:[%s114_s0] sm:$0xff]   ;;  %v49_v1 = vld [vmem:[%s114_s0 + $0x8] sm:$0xff]   ;;  %s63_s0 = smov 126  }
   0x2   :  { %24 = vrot.lane.b32.xlu1 %v23_v0, %s63_s0  ;;  %11 = vrot.lane.b32.xlu0 %v23_v0, %s64_s10  ;;  %4 = vst.msk [vmem:[%s115_s1] ss:$4 sm:$0xff] %vm3_vm0, %v23_v0   ;;  %50 = vst.msk [vmem:[%s115_s1 + $0x20] ss:$4 sm:$0xff] %vm3_vm0, %v49_v1  }
   0x6   :  { %31 = vrot.lane.b32.xlu1 %v49_v1, %s63_s0  ;;  %18 = vrot.lane.b32.xlu0 %v49_v1, %s64_s10 }
   0xa   :  { %44 = vrot.lane.b32.xlu1 %v49_v1, %s65_s15  ;;  %37 = vrot.lane.b32.xlu0 %v23_v0, %s65_s15 }
  0x74   :  { %v25_v2 = vpop.permute.xlu1 %24   ;;  %v12_v3 = vpop.permute.xlu0 %11  }
  0x75   :  { %54 = vst.msk [vmem:[%s115_s1 + $0x2] ss:$4 sm:$0xff] %vm3_vm0, %v25_v2   ;;  %51 = vst.msk [vmem:[%s115_s1 + $0x1] ss:$4 sm:$0xff] %vm3_vm0, %v12_v3  }
  0x78   :  { %v32_v4 = vpop.permute.xlu1 %31   ;;  %v19_v5 = vpop.permute.xlu0 %18  }
  0x79   :  { %56 = vst.msk [vmem:[%s115_s1 + $0x22] ss:$4 sm:$0xff] %vm3_vm0, %v32_v4   ;;  %53 = vst.msk [vmem:[%s115_s1 + $0x21] ss:$4 sm:$0xff] %vm3_vm0, %v19_v5  }
  0x7c   :  { %v45_v6 = vpop.permute.xlu1 %44   ;;  %v38_v7 = vpop.permute.xlu0 %37  }
  0x7d   :  { %59 = vst.msk [vmem:[%s115_s1 + $0x23] ss:$4 sm:$0xff] %vm3_vm0, %v45_v6   ;;  %57 = vst.msk [vmem:[%s115_s1 + $0x3] ss:$4 sm:$0xff] %vm3_vm0, %v38_v7  }

// kernel: down_block_forward.4
= control target key start
LH: loop header
LB: loop body
LE: loop exit
PB: predicated region body
PF: predicated region fallthrough
CT: control target
= control target key end

     0   :  { %v370_v1 = vmov 0   ;;  %vm106_vm0 = vcmask 130048   ;;  %s475_s1 = inlined_call_operand.vmem [shape: bf16[16,128], index: 1, kind: input, shape index: {}]   ;;  %s476_s0 = inlined_call_operand.vmem [shape: bf16[64,16], index: 0, kind: input, shape index: {}]   ;;  %s477_s2 = inlined_call_operand.vmem [shape: f32[64,1], index: 2, kind: input, shape index: {}]   ;;  %s478_s4 = inlined_call_operand.vmem [shape: bf16[64,128], index: 4, kind: input, shape index: {}]   ;;  %s479_s3 = inlined_call_operand.<no memory space> [shape: f32[1], index: 3, kind: input, shape index: {}]   ;;  %s480_s5 = inlined_call_operand.vmem [shape: bf16[64,128], index: 5, kind: output, shape index: {}]  }
   0x1   :  { %v365_v0 = vld [vmem:[%s475_s1] sm:$0xff]   ;;  %364 = vset.pattern.permute.xlu1 %v370_v1  ;;  %363 = vset.pattern.permute.xlu0 %v370_v1  ;;  %v367_v3 = vld [vmem:[%s476_s0 + $0x10] sm:$0xff]   ;;  %v368_v4 = vld [vmem:[%s476_s0 + $0x8] sm:$0xff]   ;;  %v193_v26 = vstv %s479_s3 }
   0x2   :  { %v366_v2 = vld [vmem:[%s476_s0] sm:$0xff]   ;;  %350 = vmatprep.subr.bf16.mxu0 %v365_v0  ;;  %360 = vmatprep.subr.bf16.mxu1 %v365_v0  ;;  %v369_v5 = vld [vmem:[%s476_s0 + $0x18] sm:$0xff]   ;;  %v34_v6 = vld [vmem:[%s477_s2 + $0x10] sm:$0xff] }
   0x3   :  { %351 = vmatpush3.bf16.msra.mxu0 %v365_v0  ;;  %361 = vmatpush3.bf16.msra.mxu1 %v365_v0  ;;  %v32_v7 = vld [vmem:[%s477_s2] sm:$0xff]  ;;  %v35_v8 = vld [vmem:[%s477_s2 + $0x18] sm:$0xff]  ;;  %v33_v9 = vld [vmem:[%s477_s2 + $0x8] sm:$0xff] }
   0x4   :  { %352 = vmatprep.mubr.msk.bf16.mxu0 %vm106_vm0, %v366_v2  ;;  %356 = vmatprep.mubr.msk.bf16.mxu1 %vm106_vm0, %v367_v3  ;;  %v37_v10 = vld [vmem:[%s477_s2 + $0x28] sm:$0xff]  ;;  %v36_v11 = vld [vmem:[%s477_s2 + $0x20] sm:$0xff]  ;;  %v39_v12 = vld [vmem:[%s477_s2 + $0x38] sm:$0xff] }
   0x5   :  { %52 = vperm.xlu1 %364, %v34_v6   ;;  %42 = vperm.xlu0 %363, %v32_v7   ;;  %v38_v13 = vld [vmem:[%s477_s2 + $0x30] sm:$0xff]  ;;  %v339_v20 = vld [vmem:[%s478_s4 + $0x8] sm:$0xff]   ;;  %v341_v22 = vld [vmem:[%s478_s4 + $0x18] sm:$0xff]  }
   0x6   :  { %353 = vmatmul.mubr.msk.bf16.vlgmr.msra.gmra.mxu0 %vm106_vm0, %v368_v4  ;;  %357 = vmatmul.mubr.msk.bf16.vlgmr.msra.gmra.mxu1 %vm106_vm0, %v369_v5  ;;  %v449_v23 = vld [vmem:[%s478_s4] sm:$0xff]   ;;  %v454_v24 = vld [vmem:[%s478_s4 + $0x10] sm:$0xff]   ;;  %v309_v30 = vunpack.c.l.bf16 %v339_v20  ;;  %v317_v31 = vunpack.c.l.bf16 %v341_v22  ;;  %v310_v42 = vunpack.c.h.bf16 %v339_v20  ;;  %v318_v44 = vunpack.c.h.bf16 %v341_v22 }
   0x7   :  { %v305_v33 = vunpack.c.l.bf16 %v449_v23  ;;  %v313_v35 = vunpack.c.l.bf16 %v454_v24  ;;  %v306_v48 = vunpack.c.h.bf16 %v449_v23  ;;  %v314_v53 = vunpack.c.h.bf16 %v454_v24 }
   0x9   :  { %57 = vperm.xlu1 %364, %v35_v8   ;;  %47 = vperm.xlu0 %363, %v33_v9  }
   0xd   :  { %67 = vperm.xlu1 %364, %v37_v10   ;;  %62 = vperm.xlu0 %363, %v36_v11  }
  0x11   :  { %77 = vperm.xlu1 %364, %v39_v12   ;;  %72 = vperm.xlu0 %363, %v38_v13  }
  0x80   :  { %v43_v14 = vpop.permute.xlu0 %42  ;;  %v53_v15 = vpop.permute.xlu1 %52 }
  0x84   :  { %v48_v16 = vpop.permute.xlu0 %47  ;;  %v58_v17 = vpop.permute.xlu1 %57 }
  0x88   :  { %v63_v18 = vpop.permute.xlu0 %62  ;;  %v68_v19 = vpop.permute.xlu1 %67 }
  0x8c   :  { %v73_v21 = vpop.permute.xlu0 %72  ;;  %v78_v36 = vpop.permute.xlu1 %77 }
  0xc6   :  { %v354_v25 = vpop.f32.mrf.mxu0  ;;  %v358_v27 = vpop.f32.mrf.mxu1 }
  0xc7   :  { %v162_v28 = vadd.f32 %v354_v25, %v53_v15  ;;  %v178_v29 = vadd.f32 %v358_v27, %v73_v21 }
  0xc8   :  { %v153_v32 = vpop.f32.mrf.mxu0  ;;  %v169_v34 = vpop.f32.mrf.mxu1 }
  0xc9   :  { %vm187_vm1 = vcmp.ge.f32.partialorder %v162_v28, 0.0  ;;  %v196_v37 = vmul.f32 %v193_v26, %v162_v28  ;;  %vm191_vm2 = vcmp.ge.f32.partialorder %v178_v29, 0.0  ;;  %v200_v38 = vmul.f32 %v193_v26, %v178_v29 }
  0xca   :  { %v154_v39 = vadd.f32 %v153_v32, %v43_v14  ;;  %v170_v40 = vadd.f32 %v169_v34, %v63_v18  ;;  %v355_v41 = vpop.f32.mrf.mxu0  ;;  %v359_v43 = vpop.f32.mrf.mxu1 }
  0xcb   :  { %v204_v45 = vsel %vm187_vm1, %v162_v28, %v196_v37  ;;  %v165_v46 = vadd.f32 %v355_v41, %v58_v17  ;;  %v181_v47 = vadd.f32 %v359_v43, %v78_v36  ;;  %v208_v49 = vsel %vm191_vm2, %v178_v29, %v200_v38 }
  0xcc   :  { %vm185_vm3 = vcmp.ge.f32.partialorder %v154_v39, 0.0  ;;  %v194_v50 = vmul.f32 %v193_v26, %v154_v39  ;;  %v156_v51 = vpop.f32.mrf.mxu0  ;;  %v172_v52 = vpop.f32.mrf.mxu1  ;;  %vm189_vm4 = vcmp.ge.f32.partialorder %v170_v40, 0.0  ;;  %v198_v54 = vmul.f32 %v193_v26, %v170_v40 }
  0xcd   :  { %vm188_vm5 = vcmp.ge.f32.partialorder %v165_v46, 0.0  ;;  %v197_v55 = vmul.f32 %v193_v26, %v165_v46  ;;  %v228_v56 = vsub.f32 %v204_v45, %v309_v30  ;;  %vm192_vm6 = vcmp.ge.f32.partialorder %v181_v47, 0.0 }
  0xce   :  { %v201_v57 = vmul.f32 %v193_v26, %v181_v47  ;;  %v157_v58 = vadd.f32 %v156_v51, %v48_v16  ;;  %v232_v59 = vsub.f32 %v208_v49, %v317_v31  ;;  %v202_v60 = vsel %vm185_vm3, %v154_v39, %v194_v50 }
  0xcf   :  { %v205_v61 = vsel %vm188_vm5, %v165_v46, %v197_v55  ;;  %v173_v62 = vadd.f32 %v172_v52, %v68_v19  ;;  %v206_v63 = vsel %vm189_vm4, %v170_v40, %v198_v54  ;;  %v226_v9 = vsub.f32 %v202_v60, %v305_v33 }
  0xd0   :  { %v229_v0 = vsub.f32 %v205_v61, %v310_v42  ;;  %v209_v1 = vsel %vm192_vm6, %v181_v47, %v201_v57  ;;  %vm186_vm7 = vcmp.ge.f32.partialorder %v157_v58, 0.0  ;;  %v195_v3 = vmul.f32 %v193_v26, %v157_v58 }
  0xd1   :  { %v233_v2 = vsub.f32 %v209_v1, %v318_v44  ;;  %vm190_vm8 = vcmp.ge.f32.partialorder %v173_v62, 0.0  ;;  %v199_v4 = vmul.f32 %v193_v26, %v173_v62  ;;  %v230_v10 = vsub.f32 %v206_v63, %v313_v35 }
  0xd2   :  { %v327_v5 = vpack.c.bf16 %v229_v0, %v228_v56  ;;  %v203_v7 = vsel %vm186_vm7, %v157_v58, %v195_v3 }
  0xd3   :  { %v337_v6 = vpack.c.bf16 %v233_v2, %v232_v59  ;;  %v207_v8 = vsel %vm190_vm8, %v173_v62, %v199_v4  ;;  %v227_v11 = vsub.f32 %v203_v7, %v306_v48 }
  0xd4   :  { %342 = vst [vmem:[%s480_s5 + $0x8] sm:$0xff] %v327_v5   ;;  %v231_v12 = vsub.f32 %v207_v8, %v314_v53 }
  0xd5   :  { %344 = vst [vmem:[%s480_s5 + $0x18] sm:$0xff] %v337_v6   ;;  %v322_v13 = vpack.c.bf16 %v227_v11, %v226_v9 }
  0xd6   :  { %v332_v14 = vpack.c.bf16 %v231_v12, %v230_v10 }
  0xd7   :  { %323 = vst [vmem:[%s480_s5] sm:$0xff] %v322_v13  }
  0xd8   :  { %343 = vst [vmem:[%s480_s5 + $0x10] sm:$0xff] %v332_v14  }

// kernel: down_block_forward.5
= control target key start
LH: loop header
LB: loop body
LE: loop exit
PB: predicated region body
PF: predicated region fallthrough
CT: control target
= control target key end

     0   :  { %v276_v1 = vmov 0   ;;  %s370_s1 = inlined_call_operand.vmem [shape: bf16[256,128], index: 1, kind: input, shape index: {}]   ;;  %s371_s0 = inlined_call_operand.vmem [shape: bf16[8,256], index: 0, kind: input, shape index: {}]   ;;  %s372_s2 = inlined_call_operand.vmem [shape: f32[8,1], index: 2, kind: input, shape index: {}]   ;;  %s373_s3 = inlined_call_operand.<no memory space> [shape: f32[1], index: 3, kind: input, shape index: {}]   ;;  %s374_s4 = inlined_call_operand.vmem [shape: f32[8,128], index: 4, kind: input, shape index: {}]   ;;  %s375_s5 = inlined_call_operand.vmem [shape: f32[8,128], index: 5, kind: output, shape index: {}]  }
   0x1   :  { %v258_v0 = vld [vmem:[%s370_s1 + $0x78] sm:$0xff]   ;;  %257 = vset.pattern.permute.xlu0 %v276_v1  ;;  %v260_v3 = vld [vmem:[%s370_s1 + $0x70] sm:$0xff]   ;;  %v262_v5 = vld [vmem:[%s370_s1 + $0x68] sm:$0xff]   ;;  %v206_v25 = vstv %s373_s3 }
   0x2   :  { %v259_v2 = vld [vmem:[%s370_s1 + $0x38] sm:$0xff]   ;;  %234 = vmatprep.subr.bf16.mxu0 %v258_v0  ;;  %v261_v4 = vld [vmem:[%s370_s1 + $0x30] sm:$0xff]   ;;  %v263_v6 = vld [vmem:[%s370_s1 + $0x28] sm:$0xff]  }
   0x3   :  { %235 = vmatpush3.bf16.msra.mxu0 %v259_v2  ;;  %v264_v7 = vld [vmem:[%s370_s1 + $0x60] sm:$0xff]   ;;  %v266_v9 = vld [vmem:[%s370_s1 + $0x58] sm:$0xff]   ;;  %v268_v11 = vld [vmem:[%s370_s1 + $0x50] sm:$0xff]  }
   0x4   :  { %236 = vmatprep.subr.bf16.mxu0 %v260_v3  ;;  %v265_v8 = vld [vmem:[%s370_s1 + $0x20] sm:$0xff]   ;;  %v267_v10 = vld [vmem:[%s370_s1 + $0x18] sm:$0xff]   ;;  %v269_v15 = vld [vmem:[%s370_s1 + $0x10] sm:$0xff]  }
   0x5   :  { %v22_v12 = vld [vmem:[%s371_s0] sm:$0xff]  ;;  %v270_v16 = vld [vmem:[%s370_s1 + $0x48] sm:$0xff]  }
   0x6   :  { %v55_v13 = vld [vmem:[%s372_s2] sm:$0xff]  ;;  %v217_v14 = vcombine.high %v22_v12, %v22_v12  ;;  %v271_v17 = vld [vmem:[%s370_s1 + $0x8] sm:$0xff]   ;;  %v216_v20 = vcombine.low %v22_v12, %v22_v12 }
   0x7   :  { %237 = vmatpush3.bf16.msra.mxu0 %v261_v4  ;;  %58 = vperm.xlu0 %257, %v55_v13   ;;  %v272_v18 = vld [vmem:[%s370_s1 + $0x40] sm:$0xff]  }
   0x8   :  { %238 = vmatprep.subr.bf16.mxu0 %v262_v5  ;;  %196 = vmatprep.mubr.bf16.mxu0 %v217_v14  ;;  %v273_v19 = vld [vmem:[%s370_s1] sm:$0xff]  }
   0x9   :  { %v209_v29 = vld [vmem:[%s374_s4] sm:$0xff] }
   0xb   :  { %239 = vmatpush3.bf16.msra.mxu0 %v263_v6 }
   0xc   :  { %240 = vmatprep.subr.bf16.mxu0 %v264_v7 }
   0xf   :  { %241 = vmatpush3.bf16.msra.mxu0 %v265_v8 }
  0x10   :  { %242 = vmatprep.subr.bf16.mxu0 %v266_v9 }
  0x13   :  { %243 = vmatpush3.bf16.msra.mxu0 %v267_v10 }
  0x14   :  { %244 = vmatprep.subr.bf16.mxu0 %v268_v11 }
  0x17   :  { %245 = vmatpush3.bf16.msra.mxu0 %v269_v15 }
  0x18   :  { %246 = vmatprep.subr.bf16.mxu0 %v270_v16 }
  0x1b   :  { %247 = vmatpush3.bf16.msra.mxu0 %v271_v17 }
  0x1c   :  { %248 = vmatprep.subr.bf16.mxu0 %v272_v18 }
  0x1f   :  { %249 = vmatpush3.bf16.msra.mxu0 %v273_v19 }
  0x22   :  { %197 = vmatmul.mubr.bf16.vlgmr.msra.gmra.mxu0 %v216_v20 }
  0x82   :  { %v59_v23 = vpop.permute.xlu0 %58 }
  0xe2   :  { %v250_v21 = vpop.f32.mrf.mxu0 }
  0xe4   :  { %v251_v22 = vpop.f32.mrf.mxu0 }
  0xe5   :  { %v252_v24 = vadd.f32 %v251_v22, %v250_v21 }
  0xe6   :  { %v253_v26 = vpop.f32.mrf.mxu0 }
  0xe7   :  { %v199_v27 = vadd.f32 %v252_v24, %v59_v23 }
  0xe8   :  { %v254_v28 = vpop.f32.mrf.mxu0 }
  0xe9   :  { %vm205_vm0 = vcmp.ge.f32.partialorder %v199_v27, 0.0  ;;  %v207_v30 = vmul.f32 %v206_v25, %v199_v27 }
  0xeb   :  { %v208_v31 = vsel %vm205_vm0, %v199_v27, %v207_v30 }
  0xec   :  { %v210_v32 = vadd.f32 %v209_v29, %v208_v31 }
  0xee   :  { %211 = vst [vmem:[%s375_s5] sm:$0xff] %v210_v32 }

</bundles_post_ra>
